<compile_context>
chip_gen: v7x
topology: tpu7x:2x2x1
jax: 0.10.0
libtpu: 0.0.40
codegen_flags: <defaults>
</compile_context>

<pallas_src>
import jax
import jax.numpy as jnp
from jax.experimental import pallas as pl
from jax.experimental.pallas import tpu as pltpu

_MIB = 1024 * 1024


def _round_up(x, m):
    return ((x + m - 1) // m) * m


def _hw_params():
    """Generation-aware knobs: (x-tile budget, vmem_limit_bytes, row cap, #TCs).

    v5e/v6e: 128 MiB physical VMEM, 1 TensorCore  -> big tiles, high limit.
    v7x (or unknown): 64 MiB VMEM per TC, 2 TCs   -> conservative, even grid.
    """
    try:
        vmem_cap = int(pltpu.get_tpu_info().vmem_capacity_bytes)
    except Exception:  # fall back to the safest (v7x-sized) settings
        vmem_cap = 64 * _MIB
    if vmem_cap >= 100 * _MIB:
        return 56 * _MIB, 96 * _MIB, 4096, 1
    return 24 * _MIB, 48 * _MIB, 2048, 2


def _choose_row_tile(m, h, dtype_bytes, budget_bytes, num_cores, row_cap):
    """Row tile from a VMEM budget (2 pipeline buffers of the (tm, H) x tile),
    balanced so the grid step count is a multiple of the TensorCore count."""
    per_row = 2 * h * dtype_bytes                       # double-buffered rows
    tm = min(row_cap, max(128, budget_bytes // max(per_row, 1)))
    tm = max(128, (tm // 128) * 128)                    # lane-dense output rows
    m_pad = _round_up(m, 128)
    if tm >= m_pad:
        return int(m_pad)                               # single tile covers M
    num_tiles = pl.cdiv(m_pad, tm)
    if num_cores > 1:
        # Balance across v7x's two TensorCores (single "parallel" grid axis).
        num_tiles = _round_up(num_tiles, num_cores)
        tm = _round_up(pl.cdiv(m_pad, num_tiles), 128)
    return int(tm)


def _value_head_kernel(x_ref, w_ref, b_ref, o_ref):
    """o[1, tm//128, 128] = rowsum(x[tm, H] * w[1, H]) + b, f32 accumulation."""
    tm, h = x_ref.shape
    x3 = x_ref[...].reshape(tm // 128, 128, h)   # free sublane-group split
    prod = x3 * w_ref[...]                       # per-vreg promote to f32, VPU mul
    row_sum = jnp.sum(prod, axis=-1)             # (tm//128, 128) f32, XLU lane reduce
    o_ref[0] = row_sum + b_ref[0]                # scalar bias from SMEM, lane-dense store


def value_head(hidden_states, weight, bias, *, row_tile=None):
    """ValueHead forward.

    hidden_states: [B, S, H]  (any float dtype)
    weight:        [1, H]     (torch nn.Linear(H, 1).weight layout)
    bias:          [1]
    returns:       [B, S]  float32  (== Linear(...).squeeze(-1), f32 accumulation)
    """
    B, S, H = hidden_states.shape
    M = B * S
    x2d = hidden_states.reshape(M, H)
    w_row = weight.reshape(1, H).astype(jnp.float32)    # lane-dense weight row
    b1 = bias.reshape(1).astype(jnp.float32)            # scalar bias -> SMEM

    budget, vmem_limit, row_cap, num_cores = _hw_params()
    dtype_bytes = jnp.dtype(hidden_states.dtype).itemsize
    if row_tile is not None:
        tm = _round_up(int(row_tile), 128)
    else:
        tm = _choose_row_tile(M, H, dtype_bytes, budget, num_cores, row_cap)

    num_tiles = pl.cdiv(M, tm)          # ragged tail: OOB input rows read padded,
    m_pad = num_tiles * tm              # padded output rows sliced off below.

    out = pl.pallas_call(
        _value_head_kernel,
        out_shape=jax.ShapeDtypeStruct((num_tiles, tm // 128, 128), jnp.float32),
        grid_spec=pltpu.PrefetchScalarGridSpec(
            num_scalar_prefetch=0,
            grid=(num_tiles,),
            in_specs=[
                pl.BlockSpec((tm, H), lambda i: (i, 0)),             # x row tile
                pl.BlockSpec((1, H), lambda i: (0, 0)),              # weight row
                pl.BlockSpec(memory_space=pltpu.MemorySpace.SMEM),   # bias scalar
            ],
            out_specs=pl.BlockSpec((1, tm // 128, 128), lambda i: (i, 0, 0)),
        ),
        compiler_params=pltpu.CompilerParams(
            dimension_semantics=("parallel",),
            vmem_limit_bytes=vmem_limit,
        ),
    )(x2d, w_row, b1)

    return out.reshape(m_pad)[:M].reshape(B, S)


def model_forward(batch, params):
    """Mirror of Model.forward (training branch) for the translatable part.

    batch['last_hidden_state'] stands in for backbone(...).hidden_states[-1];
    batch['logits'] stands in for backbone(...).logits.
    """
    outputs = {}
    logits = batch["logits"]
    if logits.dtype != jnp.float32:
        logits = logits.astype(jnp.float32)
    outputs["logits"] = logits
    outputs["value"] = value_head(
        batch["last_hidden_state"], params["summary_weight"],
        params["summary_bias"])
    return outputs


def _ref_value(hidden_states, weight, bias):
    B, S, H = hidden_states.shape
    x = hidden_states.astype(jnp.float32).reshape(-1, H)
    return (x @ weight.reshape(H, 1).astype(jnp.float32)
            + bias.astype(jnp.float32)).reshape(B, S)


if __name__ == "__main__":
    key = jax.random.PRNGKey(0)
    B, S, H, V = 2, 8, 32, 64  # batch, seq, hidden, (toy) vocab

    k_h, k_l, k_w, k_r, k_m = jax.random.split(key, 5)
    last_hidden_state = jax.random.normal(k_h, (B, S, H), dtype=jnp.bfloat16)
    logits = jax.random.normal(k_l, (B, S, V), dtype=jnp.bfloat16)

    # ValueHead params: nn.Linear(H, 1) with bias zeroed (as in Model.__init__)
    bound = 1.0 / (H ** 0.5)
    summary_weight = jax.random.uniform(
        k_w, (1, H), dtype=jnp.float32, minval=-bound, maxval=bound)
    summary_bias = jnp.zeros((1,), dtype=jnp.float32)
    params = {"summary_weight": summary_weight, "summary_bias": summary_bias}

    batch = {"last_hidden_state": last_hidden_state, "logits": logits}

    outputs = model_forward(batch, params)
    jax.block_until_ready(outputs["value"])

    ref = _ref_value(last_hidden_state, summary_weight, summary_bias)
    assert outputs["value"].shape == (B, S)
    assert outputs["logits"].dtype == jnp.float32
    assert jnp.allclose(outputs["value"], ref, atol=1e-4, rtol=1e-5)

    # Ragged case: M not a multiple of the 128-row tile -> exercises padded
    # input rows and the [:M] slice on the lane-dense output slab.
    Br, Sr, Hr = 3, 5, 48
    kw2, kh2 = jax.random.split(k_r)
    w_r = jax.random.uniform(kw2, (1, Hr), dtype=jnp.float32,
                             minval=-1.0 / (Hr ** 0.5), maxval=1.0 / (Hr ** 0.5))
    hidden_ragged = jax.random.normal(kh2, (Br, Sr, Hr), dtype=jnp.bfloat16)
    val_ragged = value_head(hidden_ragged, w_r, summary_bias)
    jax.block_until_ready(val_ragged)
    ref_ragged = _ref_value(hidden_ragged, w_r, summary_bias)
    assert val_ragged.shape == (Br, Sr)
    assert jnp.allclose(val_ragged, ref_ragged, atol=1e-4, rtol=1e-5)

    # Multi-tile ragged case: forces grid > 1 with a partial last tile, so the
    # padded rows land inside a written lane-dense block and are sliced off.
    Bm, Sm = 2, 200                      # M = 400, row_tile = 128 -> 4 grid steps
    hidden_multi = jax.random.normal(k_m, (Bm, Sm, H), dtype=jnp.bfloat16)
    val_multi = value_head(hidden_multi, summary_weight, summary_bias,
                           row_tile=128)
    jax.block_until_ready(val_multi)
    ref_multi = _ref_value(hidden_multi, summary_weight, summary_bias)
    assert val_multi.shape == (Bm, Sm)
    assert jnp.allclose(val_multi, ref_multi, atol=1e-4, rtol=1e-5)

    print("KERNEL_OK")
</pallas_src>

<mosaic_0001>
module attributes {stable_mosaic.version = 11 : i64} {
  func.func @_value_head_kernel(%arg0: i32, %arg1: memref<128x32xbf16, #tpu.memory_space<vmem>>, %arg2: memref<1x32xf32, #tpu.memory_space<vmem>>, %arg3: memref<1xf32, #tpu.memory_space<smem>>, %arg4: memref<1x1x128xf32, #tpu.memory_space<vmem>>) attributes {dimension_semantics = [#tpu.dimension_semantics<parallel>], iteration_bounds = array<i64: 1>, scalar_prefetch = 0 : i64, scratch_operands = 0 : i64, tpu.core_type = #tpu.core_type<tc>, window_params = [{transform_indices = @transform_0, window_bounds = array<i64: 128, 32>}, {pipeline_mode = #tpu.pipeline_mode<synchronous>, transform_indices = @transform_1, window_bounds = array<i64: 1, 32>}, {transform_indices = @transform_2, window_bounds = array<i64: 1>}, {transform_indices = @transform_3, window_bounds = array<i64: 1, 1, 128>}]} {
    %c0 = arith.constant 0 : index
    %c0_0 = arith.constant 0 : index
    %0 = vector.load %arg1[%c0, %c0_0] : memref<128x32xbf16, #tpu.memory_space<vmem>>, vector<128x32xbf16>
    %1 = vector.shape_cast %0 : vector<128x32xbf16> to vector<1x128x32xbf16>
    %c0_1 = arith.constant 0 : index
    %c0_2 = arith.constant 0 : index
    %2 = vector.load %arg2[%c0_1, %c0_2] : memref<1x32xf32, #tpu.memory_space<vmem>>, vector<1x32xf32>
    %3 = arith.extf %1 : vector<1x128x32xbf16> to vector<1x128x32xf32>
    %4 = vector.shape_cast %2 : vector<1x32xf32> to vector<1x1x32xf32>
    %5 = vector.broadcast %4 : vector<1x1x32xf32> to vector<1x128x32xf32>
    %6 = arith.mulf %3, %5 : vector<1x128x32xf32>
    %cst = arith.constant dense<0.000000e+00> : vector<1x128xf32>
    %7 = vector.multi_reduction <add>, %6, %cst [2] : vector<1x128x32xf32> to vector<1x128xf32>
    %c0_3 = arith.constant 0 : index
    %8 = memref.load %arg3[%c0_3] : memref<1xf32, #tpu.memory_space<smem>>
    %9 = vector.broadcast %8 : f32 to vector<1x128xf32>
    %10 = arith.addf %7, %9 : vector<1x128xf32>
    %c0_4 = arith.constant 0 : index
    %c0_5 = arith.constant 0 : index
    %c0_6 = arith.constant 0 : index
    %11 = vector.load %arg4[%c0_4, %c0_5, %c0_6] : memref<1x1x128xf32, #tpu.memory_space<vmem>>, vector<1x1x128xf32>
    %12 = vector.shape_cast %11 : vector<1x1x128xf32> to vector<1x128xf32>
    %13 = vector.shape_cast %10 : vector<1x128xf32> to vector<1x1x128xf32>
    tpu.vector_store %arg4[%c0_4, %c0_5, %c0_6], %13 {strides = array<i32>} : memref<1x1x128xf32, #tpu.memory_space<vmem>>, vector<1x1x128xf32>,
    return
  }
  func.func @transform_0(%arg0: i32) -> (i32, i32) {
    %c0_i32 = arith.constant 0 : i32
    %c0_i32_0 = arith.constant 0 : i32
    return %arg0, %c0_i32 : i32, i32
  }
  func.func @transform_1(%arg0: i32) -> (i32, i32) {
    %c0_i32 = arith.constant 0 : i32
    %c0_i32_0 = arith.constant 0 : i32
    %c0_i32_1 = arith.constant 0 : i32
    return %c0_i32, %c0_i32_0 : i32, i32
  }
  func.func @transform_2(%arg0: i32) -> i32 {
    %c0_i32 = arith.constant 0 : i32
    %c0_i32_0 = arith.constant 0 : i32
    return %c0_i32 : i32
  }
  func.func @transform_3(%arg0: i32) -> (i32, i32, i32) {
    %c0_i32 = arith.constant 0 : i32
    %c0_i32_0 = arith.constant 0 : i32
    %c0_i32_1 = arith.constant 0 : i32
    return %arg0, %c0_i32, %c0_i32_0 : i32, i32, i32
  }
}

</mosaic_0001>

<bundles_post_ra>
// kernel: tpu_custom_call.1
= control target key start
LH: loop header
LB: loop body
LE: loop exit
PB: predicated region body
PF: predicated region fallthrough
CT: control target
= control target key end

     0   :  { %9 = vsyncpa [#allocation4], 0  ;;  %s530_s0 = inlined_call_operand.hbm [shape: bf16[16,32], index: 0, kind: input, shape index: {}]   ;;  %s531_s1 = inlined_call_operand.vmem [shape: f32[1,32], index: 1, kind: input, shape index: {}]   ;;  %s532_s2 = inlined_call_operand.<no memory space> [shape: f32[1], index: 2, kind: input, shape index: {}]   ;;  %s533_s3 = inlined_call_operand.hbm [shape: f32[1,1,128], index: 3, kind: output, shape index: {}]  }
   0x1   :  { %10 = vsyncpa [#allocation5], 0 }
   0x2   :  { %15 = vsyncadd [#allocation4], 896  ;;  %s388_s12 = smov [#allocation3]   ;;  %s340_s16 = scalar_lea.hbm %s530_s0, 128 }
   0x3   :  { %s16_s13 = sshll.u32 %s388_s12, 4  ;;  %p341_p0 = scmp.ne.s32.totalorder %s530_s0, %s340_s16  ;;  %s17_s13 = int_to_ptr.vmem [resolvable:$true] %s16_s13 }
   0x4   :  { %p344_p1 = scmp.lt.u32.totalorder %s340_s16, %s530_s0 }
   0x6   :  { %p346_p2 = pnand %p344_p1, %p341_p0 }
   0x8   :  { %349 = shalt.err (!%p346_p2)
}
   0x9   :  { %s350_s21 = scalar_lea.vmem %s17_s13, 128  ;;  %s354_s22 = scalar_lea.vmem %s17_s13, 1024 }
   0xa   :  { %p351_p3 = scmp.ne.s32.totalorder %s17_s13, %s350_s21  ;;  %p355_p4 = scmp.lt.s32.totalorder %s17_s13, %s17_s13 }
   0xb   :  { %p356_p5 = scmp.lt.s32.totalorder %s354_s22, %s350_s21 }
   0xd   :  { %p357_p6 = por %p356_p5, %p355_p4 }
   0xf   :  { %p358_p7 = pnand %p357_p6, %p351_p3 }
  0x11   :  { %361 = shalt.err (!%p358_p7)
}
  0x12   :  { %s389_s23 = smov 64   ;;  %s390_s24 = smov 4  }
  0x13   :  { %22 = dma.hbm_to_vmem [thread:$0]  %s530_s0, 128, %s17_s13, [#allocation4], %s389_s23, %s389_s23, %s390_s24  }
  0x14   :  { %384 = dma.done.wait [#allocation4], 1024  }
  0x15   :  { %385 = vsyncadd [#allocation4], 4294966272  ;;  %v298_v0 = vld [vmem:[#allocation3] sm:$0xff]   ;;  %v329_v2 = vld [vmem:[#allocation3 + $0x8] sm:$0xff]   ;;  %vm85_vm0 = vcmask 261120   ;;  %v168_v57 = vlaneseq  ;;  %v470_v62 = vstv %s532_s2  ;;  %vm179_vm1 = vcmask 130112  }
  0x16   :  { %v427_v1 = vld [vmem:[%s531_s1] ss:$0 sm:$0xff]  ;;  %v299_v3 = vunpack.c.l.bf16 %v298_v0  ;;  %v303_v4 = vunpack.c.l.bf16 %v329_v2  ;;  %v300_v5 = vunpack.c.h.bf16 %v298_v0  ;;  %v304_v6 = vunpack.c.h.bf16 %v329_v2  ;;  %v330_v7 = vld [vmem:[#allocation3 + $0x10] sm:$0xff]   ;;  %v331_v14 = vld [vmem:[#allocation3 + $0x18] sm:$0xff]   ;;  %s391_s2 = smov [#allocation6]  }
  0x17   :  { %v307_v8 = vunpack.c.l.bf16 %v330_v7  ;;  %v308_v9 = vunpack.c.h.bf16 %v330_v7  ;;  %v311_v17 = vunpack.c.l.bf16 %v331_v14  ;;  %v312_v18 = vunpack.c.h.bf16 %v331_v14  ;;  %v332_v23 = vld [vmem:[#allocation3 + $0x20] sm:$0xff]   ;;  %v333_v30 = vld [vmem:[#allocation3 + $0x28] sm:$0xff]   ;;  %v334_v37 = vld [vmem:[#allocation3 + $0x30] sm:$0xff]   ;;  %s287_s29 = sshll.u32 %s391_s2, 4  ;;  %s288_s29 = int_to_ptr.vmem [resolvable:$true] %s287_s29 }
  0x18   :  { %v69_v10 = vmul.f32 %v299_v3, %v427_v1  ;;  %v71_v11 = vmul.f32 %v303_v4, %v427_v1  ;;  %v70_v12 = vmul.f32 %v300_v5, %v427_v1  ;;  %v72_v13 = vmul.f32 %v304_v6, %v427_v1  ;;  %v335_v44 = vld [vmem:[#allocation3 + $0x38] sm:$0xff]   ;;  %s362_s30 = scalar_lea.vmem %s288_s29, 16  ;;  %s366_s4 = scalar_lea.vmem %s288_s29, 32 }
  0x19   :  { %v73_v21 = vmul.f32 %v307_v8, %v427_v1  ;;  %v74_v22 = vmul.f32 %v308_v9, %v427_v1  ;;  %v75_v24 = vmul.f32 %v311_v17, %v427_v1  ;;  %v76_v25 = vmul.f32 %v312_v18, %v427_v1  ;;  %p363_p8 = scmp.ne.s32.totalorder %s288_s29, %s362_s30  ;;  %p367_p9 = scmp.lt.s32.totalorder %s288_s29, %s288_s29 }
  0x1a   :  { %v86_v15 = vsel %vm85_vm0, %v69_v10, 0.0  ;;  %v92_v16 = vsel %vm85_vm0, %v71_v11, 0.0  ;;  %v89_v19 = vsel %vm85_vm0, %v70_v12, 0.0  ;;  %v95_v20 = vsel %vm85_vm0, %v72_v13, 0.0  ;;  %p368_p10 = scmp.lt.s32.totalorder %s366_s4, %s362_s30 }
  0x1b   :  { %87 = vadd.xlane.f32.xlu0 %v86_v15  ;;  %93 = vadd.xlane.f32.xlu1 %v92_v16  ;;  %v98_v26 = vsel %vm85_vm0, %v73_v21, 0.0  ;;  %v101_v27 = vsel %vm85_vm0, %v74_v22, 0.0  ;;  %v315_v28 = vunpack.c.l.bf16 %v332_v23  ;;  %v316_v29 = vunpack.c.h.bf16 %v332_v23 }
  0x1c   :  { %v104_v31 = vsel %vm85_vm0, %v75_v24, 0.0  ;;  %v107_v32 = vsel %vm85_vm0, %v76_v25, 0.0  ;;  %v319_v35 = vunpack.c.l.bf16 %v333_v30  ;;  %v320_v36 = vunpack.c.h.bf16 %v333_v30  ;;  %p369_p11 = por %p368_p10, %p367_p9 }
  0x1d   :  { %v77_v33 = vmul.f32 %v315_v28, %v427_v1  ;;  %v78_v34 = vmul.f32 %v316_v29, %v427_v1  ;;  %v323_v38 = vunpack.c.l.bf16 %v334_v37  ;;  %v324_v39 = vunpack.c.h.bf16 %v334_v37 }
  0x1e   :  { %v79_v42 = vmul.f32 %v319_v35, %v427_v1  ;;  %v80_v43 = vmul.f32 %v320_v36, %v427_v1  ;;  %v327_v45 = vunpack.c.l.bf16 %v335_v44  ;;  %v328_v46 = vunpack.c.h.bf16 %v335_v44  ;;  %p370_p12 = pnand %p369_p11, %p363_p8 }
  0x1f   :  { %90 = vadd.xlane.f32.xlu0 %v89_v19  ;;  %96 = vadd.xlane.f32.xlu1 %v95_v20  ;;  %v110_v40 = vsel %vm85_vm0, %v77_v33, 0.0  ;;  %v113_v41 = vsel %vm85_vm0, %v78_v34, 0.0  ;;  %v81_v49 = vmul.f32 %v323_v38, %v427_v1  ;;  %v82_v50 = vmul.f32 %v324_v39, %v427_v1 }
  0x20   :  { %v116_v47 = vsel %vm85_vm0, %v79_v42, 0.0  ;;  %v119_v48 = vsel %vm85_vm0, %v80_v43, 0.0  ;;  %v83_v53 = vmul.f32 %v327_v45, %v427_v1  ;;  %v84_v54 = vmul.f32 %v328_v46, %v427_v1 }
  0x21   :  { %v122_v51 = vsel %vm85_vm0, %v81_v49, 0.0  ;;  %v125_v52 = vsel %vm85_vm0, %v82_v50, 0.0  ;;  %v461_v58 = vand.u32 127, %v168_v57  ;;  %v463_v59 = vshrl.u32 %v168_v57, 7 }
  0x22   :  { %v128_v55 = vsel %vm85_vm0, %v83_v53, 0.0  ;;  %v131_v56 = vsel %vm85_vm0, %v84_v54, 0.0  ;;  %vm186_vm2 = vcmask 195712   ;;  %vm193_vm3 = vcmask 261312  }
  0x23   :  { %99 = vadd.xlane.f32.xlu0 %v98_v26  ;;  %102 = vadd.xlane.f32.xlu1 %v101_v27  ;;  %v174_v60 = vadd.s32 4294967288, %v461_v58  ;;  %v188_v61 = vadd.s32 4294967272, %v461_v58  ;;  %v181_v0 = vadd.s32 4294967280, %v461_v58  ;;  %v195_v2 = vadd.s32 4294967264, %v461_v58 }
  0x24   :  { %v172_v3 = vsub.s32 %v461_v58, %v463_v59  ;;  %v202_v11 = vadd.s32 4294967256, %v461_v58  ;;  %v209_v18 = vadd.s32 4294967248, %v461_v58  ;;  %v216_v23 = vadd.s32 4294967240, %v461_v58 }
  0x25   :  { %v177_v5 = vsub.s32 %v174_v60, %v463_v59  ;;  %v191_v6 = vsub.s32 %v188_v61, %v463_v59  ;;  %v184_v7 = vsub.s32 %v181_v0, %v463_v59  ;;  %v198_v14 = vsub.s32 %v195_v2, %v463_v59 }
  0x26   :  { %v205_v21 = vsub.s32 %v202_v11, %v463_v59  ;;  %vm200_vm4 = vcmask 326912   ;;  %v212_v30 = vsub.s32 %v209_v18, %v463_v59  ;;  %v219_v34 = vsub.s32 %v216_v23, %v463_v59 }
  0x27   :  { %105 = vadd.xlane.f32.xlu0 %v104_v31  ;;  %108 = vadd.xlane.f32.xlu1 %v107_v32  ;;  %v223_v31 = vadd.s32 4294967232, %v461_v58  ;;  %v230_v36 = vadd.s32 4294967224, %v461_v58  ;;  %vm207_vm5 = vcmask 392512   ;;  %vm214_vm6 = vcmask 458112  }
  0x28   :  { %v237_v42 = vadd.s32 4294967216, %v461_v58  ;;  %vm221_vm7 = vcmask 523712   ;;  %vm228_vm8 = vcmask 589312   ;;  %v251_v54 = vadd.s32 4294967200, %v461_v58 }
  0x29   :  { %v233_v46 = vsub.s32 %v230_v36, %v463_v59  ;;  %vm235_vm9 = vcmask 654912   ;;  %vm242_vm10 = vcmask 720512   ;;  %vm249_vm11 = vcmask 786112  }
  0x2a   :  { %v240_v53 = vsub.s32 %v237_v42, %v463_v59  ;;  %vm256_vm12 = vcmask 851712   ;;  %vm263_vm13 = vcmask 917312   ;;  %vm270_vm14 = vcmask 982912  }
  0x2b   :  { %111 = vadd.xlane.f32.xlu0 %v110_v40  ;;  %114 = vadd.xlane.f32.xlu1 %v113_v41  ;;  %v226_v41 = vsub.s32 %v223_v31, %v463_v59  ;;  %vm277_vm15 = vcmask 1048512  }
  0x2f   :  { %117 = vadd.xlane.f32.xlu0 %v116_v47  ;;  %120 = vadd.xlane.f32.xlu1 %v119_v48  ;;  %v244_v48 = vadd.s32 4294967208, %v461_v58 }
  0x31   :  { %v247_v60 = vsub.s32 %v244_v48, %v463_v59 }
  0x33   :  { %123 = vadd.xlane.f32.xlu0 %v122_v51  ;;  %126 = vadd.xlane.f32.xlu1 %v125_v52 }
  0x37   :  { %129 = vadd.xlane.f32.xlu0 %v128_v55  ;;  %132 = vadd.xlane.f32.xlu1 %v131_v56 }
  0xa8   :  { %v88_v63 = vpop.xlane.xlu0 %87  ;;  %v94_v1 = vpop.xlane.xlu1 %93 }
  0xa9   :  { %v136_v4 = vadd.f32 %v470_v62, %v88_v63  ;;  %v138_v8 = vadd.f32 %v470_v62, %v94_v1  ;;  %v258_v63 = vadd.s32 4294967192, %v461_v58 }
  0xab   :  { %v173_v15 = vrot.slane %v136_v4, %v172_v3  ;;  %v185_v19 = vrot.slane %v138_v8, %v184_v7  ;;  %v254_v4 = vsub.s32 %v251_v54, %v463_v59 }
  0xac   :  { %v91_v9 = vpop.xlane.xlu0 %90  ;;  %v97_v10 = vpop.xlane.xlu1 %96 }
  0xad   :  { %v137_v12 = vadd.f32 %v470_v62, %v91_v9  ;;  %v139_v13 = vadd.f32 %v470_v62, %v97_v10  ;;  %v261_v10 = vsub.s32 %v258_v63, %v463_v59 }
  0xaf   :  { %v178_v16 = vrot.slane %v137_v12, %v177_v5  ;;  %v192_v17 = vrot.slane %v139_v13, %v191_v6  ;;  %v265_v5 = vadd.s32 4294967184, %v461_v58  ;;  %v272_v6 = vadd.s32 4294967176, %v461_v58 }
  0xb0   :  { %v100_v20 = vpop.xlane.xlu0 %99  ;;  %v103_v22 = vpop.xlane.xlu1 %102 }
  0xb1   :  { %v180_v24 = vsel %vm179_vm1, %v178_v16, %v173_v15  ;;  %v140_v25 = vadd.f32 %v470_v62, %v100_v20  ;;  %v141_v26 = vadd.f32 %v470_v62, %v103_v22  ;;  %v268_v16 = vsub.s32 %v265_v5, %v463_v59 }
  0xb2   :  { %v187_v27 = vsel %vm186_vm2, %v185_v19, %v180_v24 }
  0xb3   :  { %v194_v28 = vsel %vm193_vm3, %v192_v17, %v187_v27  ;;  %v199_v29 = vrot.slane %v140_v25, %v198_v14  ;;  %v206_v32 = vrot.slane %v141_v26, %v205_v21  ;;  %v275_v17 = vsub.s32 %v272_v6, %v463_v59 }
  0xb4   :  { %v106_v33 = vpop.xlane.xlu0 %105  ;;  %v109_v35 = vpop.xlane.xlu1 %108 }
  0xb5   :  { %v201_v37 = vsel %vm200_vm4, %v199_v29, %v194_v28  ;;  %v142_v38 = vadd.f32 %v470_v62, %v106_v33  ;;  %v143_v39 = vadd.f32 %v470_v62, %v109_v35 }
  0xb6   :  { %v208_v43 = vsel %vm207_vm5, %v206_v32, %v201_v37 }
  0xb7   :  { %v213_v40 = vrot.slane %v142_v38, %v212_v30  ;;  %v220_v44 = vrot.slane %v143_v39, %v219_v34 }
  0xb8   :  { %v112_v45 = vpop.xlane.xlu0 %111  ;;  %v115_v47 = vpop.xlane.xlu1 %114 }
  0xb9   :  { %v215_v49 = vsel %vm214_vm6, %v213_v40, %v208_v43  ;;  %v144_v50 = vadd.f32 %v470_v62, %v112_v45  ;;  %v145_v51 = vadd.f32 %v470_v62, %v115_v47 }
  0xba   :  { %v222_v55 = vsel %vm221_vm7, %v220_v44, %v215_v49 }
  0xbb   :  { %v227_v52 = vrot.slane %v144_v50, %v226_v41  ;;  %v234_v56 = vrot.slane %v145_v51, %v233_v46 }
  0xbc   :  { %v118_v57 = vpop.xlane.xlu0 %117  ;;  %v121_v61 = vpop.xlane.xlu1 %120 }
  0xbd   :  { %v229_v0 = vsel %vm228_vm8, %v227_v52, %v222_v55  ;;  %v146_v1 = vadd.f32 %v470_v62, %v118_v57  ;;  %v147_v2 = vadd.f32 %v470_v62, %v121_v61 }
  0xbe   :  { %v236_v7 = vsel %vm235_vm9, %v234_v56, %v229_v0 }
  0xbf   :  { %v241_v3 = vrot.slane %v146_v1, %v240_v53  ;;  %v248_v8 = vrot.slane %v147_v2, %v247_v60 }
  0xc0   :  { %v124_v9 = vpop.xlane.xlu0 %123  ;;  %v127_v11 = vpop.xlane.xlu1 %126 }
  0xc1   :  { %v243_v12 = vsel %vm242_vm10, %v241_v3, %v236_v7  ;;  %v148_v13 = vadd.f32 %v470_v62, %v124_v9  ;;  %v149_v14 = vadd.f32 %v470_v62, %v127_v11 }
  0xc2   :  { %v250_v18 = vsel %vm249_vm11, %v248_v8, %v243_v12 }
  0xc3   :  { %v255_v15 = vrot.slane %v148_v13, %v254_v4  ;;  %v262_v58 = vrot.slane %v149_v14, %v261_v10 }
  0xc4   :  { %v130_v19 = vpop.xlane.xlu0 %129  ;;  %v133_v20 = vpop.xlane.xlu1 %132 }
  0xc5   :  { %v257_v21 = vsel %vm256_vm12, %v255_v15, %v250_v18  ;;  %v150_v22 = vadd.f32 %v470_v62, %v130_v19  ;;  %v151_v23 = vadd.f32 %v470_v62, %v133_v20 }
  0xc6   :  { %v264_v26 = vsel %vm263_vm13, %v262_v58, %v257_v21 }
  0xc7   :  { %v269_v24 = vrot.slane %v150_v22, %v268_v16  ;;  %v276_v25 = vrot.slane %v151_v23, %v275_v17 }
  0xc9   :  { %v271_v27 = vsel %vm270_vm14, %v269_v24, %v264_v26 }
  0xca   :  { %v278_v59 = vsel %vm277_vm15, %v276_v25, %v271_v27 }
  0xcb   :  { %280 = vst [vmem:[#allocation6] sm:$0x1] %v278_v59 }
  0xcc   :  { %373 = shalt.err (!%p370_p12)
}
  0xcd   :  { %s374_s7 = scalar_lea.hbm %s533_s3, 16 }
  0xce   :  { %p375_p13 = scmp.ne.s32.totalorder %s533_s3, %s374_s7  ;;  %p378_p0 = scmp.lt.u32.totalorder %s374_s7, %s533_s3 }
  0xd0   :  { %p380_p1 = pnand %p378_p0, %p375_p13 }
  0xd2   :  { %383 = shalt.err (!%p380_p1)
}
  0xd3   :  { %290 = dma.vmem_to_hbm [thread:$0]  %s288_s29, 16, %s533_s3, [#allocation5]  }
  0xd4   :  { %386 = dma.done.wait [#allocation5], 16  }
  0xd5   :  { %387 = vsyncadd [#allocation5], 4294967280 }
  0xd6   :  { %294 = vsyncpa [#allocation4], 1 }
  0xd7   :  { %295 = vsyncpa [#allocation5], 1 }

</bundles_post_ra>
